<compile_context>
chip_gen: v7x
topology: tpu7x:2x2x1
jax: 0.10.0
libtpu: 0.0.40
codegen_flags: <defaults>
</compile_context>

<pallas_src>
import numpy as np

import jax
import jax.numpy as jnp
from jax import lax
from jax.experimental import pallas as pl
from jax.experimental.pallas import tpu as pltpu


def _round_up(x, m):
    return (x + m - 1) // m * m


def _buf_vmem_bytes(shape, itemsize):
    """VMEM bytes of one buffer of `shape`, padded to the (8, 128) tile layout."""
    if len(shape) == 1:
        return _round_up(shape[0] * itemsize, 512)
    lead = 1
    for d in shape[:-2]:
        lead *= int(d)
    return lead * _round_up(int(shape[-2]), 8) * _round_up(int(shape[-1]), 128) * itemsize


def _conv2d_same_kernel(x_ref, wt_ref, b_ref, o_ref):
    # x_ref : (TH + K - 1, Wp*Cin)    bf16  overlapped input rows of this tile
    # wt_ref: (K, Wp*Cin, WCOUT_PAD)  bf16  banded (Toeplitz-over-W) weights, one per kh
    # b_ref : (1, WCOUT_PAD)          f32   bias, pre-tiled over W (zero in pad lanes)
    # o_ref : (TH, WCOUT_PAD)         out   lane-dense output rows
    TH = o_ref.shape[0]
    K = wt_ref.shape[0]

    # K MXU matmuls (bf16 operands, f32 accumulation) accumulated in vregs:
    # no VMEM accumulator, no staging copies, no dtype round trips.
    acc = jnp.dot(x_ref[pl.ds(0, TH), :], wt_ref[0],
                  preferred_element_type=jnp.float32)
    for kh in range(1, K):
        acc = acc + jnp.dot(x_ref[pl.ds(kh, TH), :], wt_ref[kh],
                            preferred_element_type=jnp.float32)

    # One f32 bias add + one lane-dense (128-multiple) store; cast on store.
    o_ref[...] = (acc + b_ref[...]).astype(o_ref.dtype)


def conv2d_same(x_nchw, weight_oihw, bias, kernel_size, *, tile_h=None, out_dtype=None):
    """Matches PyTorch Conv2dSame.forward: ReflectionPad2d((ka,kb,ka,kb)) -> Conv2d."""
    K = int(kernel_size)
    ka = K // 2
    kb = ka - 1 if K % 2 == 0 else ka

    N, Cin, H, W = x_nchw.shape
    Cout = weight_oihw.shape[0]
    Wp = W + K - 1
    WCIN = Wp * Cin                        # lane-dense contraction dim per kh tap
    WCOUT = W * Cout
    WCOUT_PAD = _round_up(WCOUT, 128)      # lane-dense (unmasked vst) output dim
    out_dtype = np.dtype(x_nchw.dtype if out_dtype is None else out_dtype)
    out_itemsize = out_dtype.itemsize

    # ---- row tiling ---------------------------------------------------------
    if tile_h is None:
        tile_h = 128                       # v6e-friendly default (128 MiB VMEM)
    TH = min(_round_up(max(int(tile_h), 8), 8), _round_up(H, 8))
    n_h = -(-H // TH)
    if N * n_h < 2 and H > 8:              # keep both v7x TensorCores busy
        TH = _round_up(-(-H // 2), 8)
        n_h = -(-H // TH)
    H_eff = n_h * TH                       # output rows incl. tail padding
    TXH = TH + K - 1                       # overlapped input rows per tile

    # ---- wrapper-side layout plumbing (glue; fused by XLA) ------------------
    # NCHW -> NHWC, reflection pad in f32, cast bf16, flatten (W,Cin) into the
    # lane dim, zero-pad tail rows, then build the pre-overlapped tile view so
    # each grid step DMAs exactly its TH + K - 1 rows in a single stream.
    x_nhwc = jnp.transpose(x_nchw, (0, 2, 3, 1)).astype(jnp.float32)
    xp = jnp.pad(x_nhwc, ((0, 0), (ka, kb), (ka, kb), (0, 0)), mode="reflect")
    xp = xp.astype(jnp.bfloat16).reshape(N, H + K - 1, WCIN)
    xp = jnp.pad(xp, ((0, 0), (0, (H_eff + K - 1) - (H + K - 1)), (0, 0)))
    x_tiles = jnp.stack([xp[:, t * TH:t * TH + TXH, :] for t in range(n_h)], axis=1)

    # Banded (Toeplitz-over-W) weights fold the kw taps into the contraction:
    #   wt[kh, wp*Cin + ci, w*Cout + co] = w[kh, wp - w, ci, co]  (0 <= wp - w < K)
    w_hwio = jnp.transpose(weight_oihw, (2, 3, 1, 0)).astype(jnp.bfloat16)
    w_k = w_hwio.reshape(K, K * Cin, Cout)
    wt = jnp.zeros((K, WCIN, WCOUT_PAD), jnp.bfloat16)
    for w in range(W):                     # trace-time loop; disjoint column updates
        wt = wt.at[:, w * Cin:(w + K) * Cin, w * Cout:(w + 1) * Cout].set(w_k)

    b2d = jnp.pad(jnp.tile(bias.astype(jnp.float32), W),
                  (0, WCOUT_PAD - WCOUT)).reshape(1, WCOUT_PAD)

    # ---- grid / specs / budgets ---------------------------------------------
    grid = (N, n_h)
    cost = pl.CostEstimate(
        flops=2 * N * H_eff * K * WCIN * WCOUT_PAD,
        transcendentals=0,
        bytes_accessed=int(x_tiles.size * 2 + wt.size * 2 + b2d.size * 4
                           + N * H_eff * WCOUT_PAD * out_itemsize),
    )
    try:        # cap the scoped-VMEM request at ~75% of this generation's VMEM
        vmem_cap = int(0.75 * pltpu.get_tpu_info().vmem_capacity_bytes)
    except Exception:
        vmem_cap = 48 * 1024 * 1024        # conservative: v7x TC has only 64 MiB

    def _call(single_buffer_const):
        const_mode = {"pipeline_mode": pl.Buffered(1)} if single_buffer_const else {}
        n_const_bufs = 1 if single_buffer_const else 2
        x_spec = pl.BlockSpec((None, None, TXH, WCIN), lambda n, h: (n, h, 0, 0))
        wt_spec = pl.BlockSpec((K, WCIN, WCOUT_PAD), lambda n, h: (0, 0, 0), **const_mode)
        b_spec = pl.BlockSpec((1, WCOUT_PAD), lambda n, h: (0, 0), **const_mode)
        o_spec = pl.BlockSpec((None, TH, WCOUT_PAD), lambda n, h: (n, h, 0))

        # Actual tile footprint (alignment-padded, with real buffer counts).
        footprint = (2 * _buf_vmem_bytes((TXH, WCIN), 2)               # x, 2 bufs
                     + 2 * _buf_vmem_bytes((TH, WCOUT_PAD), out_itemsize)
                     + n_const_bufs * _buf_vmem_bytes((K, WCIN, WCOUT_PAD), 2)
                     + n_const_bufs * _buf_vmem_bytes((1, WCOUT_PAD), 4))
        vmem_limit = int(min(vmem_cap,
                             footprint + max(footprint // 2, 4 * 1024 * 1024)))

        return pl.pallas_call(
            _conv2d_same_kernel,
            out_shape=jax.ShapeDtypeStruct((N, H_eff, WCOUT_PAD), out_dtype),
            grid_spec=pltpu.PrefetchScalarGridSpec(
                num_scalar_prefetch=0,
                grid=grid,
                in_specs=[x_spec, wt_spec, b_spec],
                out_specs=o_spec,
            ),
            compiler_params=pltpu.CompilerParams(
                dimension_semantics=("parallel", "parallel"),
                vmem_limit_bytes=vmem_limit,
            ),
            cost_estimate=cost,
        )(x_tiles, wt, b2d)

    try:
        out = _call(True)
    except Exception:
        # pl.Buffered(1) single-buffering of the grid-invariant weight/bias
        # blocks is a perf-only hint; fall back to default double-buffering.
        out = _call(False)

    # Back to the module's NCHW convention (drop tail rows / pad lanes).
    out = out[:, :H, :WCOUT].reshape(N, H, W, Cout)
    return jnp.transpose(out, (0, 3, 1, 2))


if __name__ == "__main__":
    key = jax.random.PRNGKey(0)
    k_x, k_w, k_b = jax.random.split(key, 3)

    # Small shapes consistent with the module: N=2, Cin=4, H=W=16, Cout=8, K=3.
    N, Cin, H, W = 2, 4, 16, 16
    Cout, K = 8, 3

    x = jax.random.normal(k_x, (N, Cin, H, W), dtype=jnp.float32)
    bound = 1.0 / (Cin * K * K) ** 0.5
    weight = jax.random.uniform(k_w, (Cout, Cin, K, K), minval=-bound, maxval=bound,
                                dtype=jnp.float32)
    bias = jax.random.uniform(k_b, (Cout,), minval=-bound, maxval=bound,
                              dtype=jnp.float32)

    # Reference: XLA f32 conv on the same reflection-padded input.
    ka = K // 2
    kb = ka - 1 if K % 2 == 0 else ka
    x_nhwc = jnp.transpose(x, (0, 2, 3, 1))
    xp_ref = jnp.pad(x_nhwc, ((0, 0), (ka, kb), (ka, kb), (0, 0)), mode="reflect")
    ref = lax.conv_general_dilated(
        xp_ref, jnp.transpose(weight, (2, 3, 1, 0)),
        window_strides=(1, 1), padding="VALID",
        dimension_numbers=("NHWC", "HWIO", "NHWC"))
    ref = jnp.transpose(ref + bias[None, None, None, :], (0, 3, 1, 2))

    # 1) tile_h=8 -> grid (2, 2): exercises the multi-tile overlapped-block path.
    out = conv2d_same(x, weight, bias, K, tile_h=8)
    out = jax.block_until_ready(out)
    assert out.shape == (N, Cout, H, W)
    assert out.dtype == x.dtype
    # bf16 MXU operands with f32 accumulation -> loosened tolerance vs f32 ref.
    assert jnp.allclose(out, ref, atol=5e-2, rtol=5e-2), (
        float(jnp.max(jnp.abs(out - ref))))

    # 2) default tile (grid (2, 1)) with bf16 output writeback.
    out_bf16 = conv2d_same(x, weight, bias, K, out_dtype=jnp.bfloat16)
    out_bf16 = jax.block_until_ready(out_bf16)
    assert out_bf16.shape == (N, Cout, H, W)
    assert out_bf16.dtype == jnp.bfloat16
    assert jnp.allclose(out_bf16.astype(jnp.float32), ref, atol=7e-2, rtol=7e-2), (
        float(jnp.max(jnp.abs(out_bf16.astype(jnp.float32) - ref))))

    print("KERNEL_OK")
</pallas_src>

<mosaic_0001>
module attributes {stable_mosaic.version = 11 : i64} {
  func.func @_conv2d_same_kernel(%arg0: i32, %arg1: i32, %arg2: memref<1x1x10x72xbf16, #tpu.memory_space<vmem>>, %arg3: memref<3x72x128xbf16, #tpu.memory_space<vmem>>, %arg4: memref<1x128xf32, #tpu.memory_space<vmem>>, %arg5: memref<1x8x128xf32, #tpu.memory_space<vmem>>) attributes {dimension_semantics = [#tpu.dimension_semantics<parallel>, #tpu.dimension_semantics<parallel>], iteration_bounds = array<i64: 2, 2>, scalar_prefetch = 0 : i64, scratch_operands = 0 : i64, tpu.core_type = #tpu.core_type<tc>, window_params = [{transform_indices = @transform_0, window_bounds = array<i64: 1, 1, 10, 72>}, {pipeline_mode = #tpu.pipeline_mode<synchronous>, transform_indices = @transform_1, window_bounds = array<i64: 3, 72, 128>}, {pipeline_mode = #tpu.pipeline_mode<synchronous>, transform_indices = @transform_2, window_bounds = array<i64: 1, 128>}, {transform_indices = @transform_3, window_bounds = array<i64: 1, 8, 128>}]} {
    %c0 = arith.constant 0 : index
    %c0_0 = arith.constant 0 : index
    %c0_1 = arith.constant 0 : index
    %c0_2 = arith.constant 0 : index
    %0 = vector.load %arg2[%c0, %c0_0, %c0_1, %c0_2] : memref<1x1x10x72xbf16, #tpu.memory_space<vmem>>, vector<1x1x8x72xbf16>
    %1 = vector.shape_cast %0 : vector<1x1x8x72xbf16> to vector<8x72xbf16>
    %c0_3 = arith.constant 0 : index
    %c0_4 = arith.constant 0 : index
    %c0_5 = arith.constant 0 : index
    %2 = vector.load %arg3[%c0_3, %c0_4, %c0_5] : memref<3x72x128xbf16, #tpu.memory_space<vmem>>, vector<1x72x128xbf16>
    %3 = vector.shape_cast %2 : vector<1x72x128xbf16> to vector<72x128xbf16>
    %cst = arith.constant dense<0.000000e+00> : vector<8x128xf32>
    %4 = tpu.matmul %1, %3, %cst {dimension_numbers = #tpu.dot_dimension_numbers<[1], [0], [0], [1], [0, 0, 1, 1], [], []>} : vector<8x72xbf16>, vector<72x128xbf16>, vector<8x128xf32> -> vector<8x128xf32>
    %c0_6 = arith.constant 0 : index
    %c0_7 = arith.constant 0 : index
    %c1 = arith.constant 1 : index
    %c0_8 = arith.constant 0 : index
    %5 = vector.load %arg2[%c0_6, %c0_7, %c1, %c0_8] : memref<1x1x10x72xbf16, #tpu.memory_space<vmem>>, vector<1x1x8x72xbf16>
    %6 = vector.shape_cast %5 : vector<1x1x8x72xbf16> to vector<8x72xbf16>
    %c1_9 = arith.constant 1 : index
    %c0_10 = arith.constant 0 : index
    %c0_11 = arith.constant 0 : index
    %7 = vector.load %arg3[%c1_9, %c0_10, %c0_11] : memref<3x72x128xbf16, #tpu.memory_space<vmem>>, vector<1x72x128xbf16>
    %8 = vector.shape_cast %7 : vector<1x72x128xbf16> to vector<72x128xbf16>
    %cst_12 = arith.constant dense<0.000000e+00> : vector<8x128xf32>
    %9 = tpu.matmul %6, %8, %cst_12 {dimension_numbers = #tpu.dot_dimension_numbers<[1], [0], [0], [1], [0, 0, 1, 1], [], []>} : vector<8x72xbf16>, vector<72x128xbf16>, vector<8x128xf32> -> vector<8x128xf32>
    %10 = arith.addf %4, %9 : vector<8x128xf32>
    %c0_13 = arith.constant 0 : index
    %c0_14 = arith.constant 0 : index
    %c2 = arith.constant 2 : index
    %c0_15 = arith.constant 0 : index
    %11 = vector.load %arg2[%c0_13, %c0_14, %c2, %c0_15] : memref<1x1x10x72xbf16, #tpu.memory_space<vmem>>, vector<1x1x8x72xbf16>
    %12 = vector.shape_cast %11 : vector<1x1x8x72xbf16> to vector<8x72xbf16>
    %c2_16 = arith.constant 2 : index
    %c0_17 = arith.constant 0 : index
    %c0_18 = arith.constant 0 : index
    %13 = vector.load %arg3[%c2_16, %c0_17, %c0_18] : memref<3x72x128xbf16, #tpu.memory_space<vmem>>, vector<1x72x128xbf16>
    %14 = vector.shape_cast %13 : vector<1x72x128xbf16> to vector<72x128xbf16>
    %cst_19 = arith.constant dense<0.000000e+00> : vector<8x128xf32>
    %15 = tpu.matmul %12, %14, %cst_19 {dimension_numbers = #tpu.dot_dimension_numbers<[1], [0], [0], [1], [0, 0, 1, 1], [], []>} : vector<8x72xbf16>, vector<72x128xbf16>, vector<8x128xf32> -> vector<8x128xf32>
    %16 = arith.addf %10, %15 : vector<8x128xf32>
    %c0_20 = arith.constant 0 : index
    %c0_21 = arith.constant 0 : index
    %17 = vector.load %arg4[%c0_20, %c0_21] : memref<1x128xf32, #tpu.memory_space<vmem>>, vector<1x128xf32>
    %18 = vector.broadcast %17 : vector<1x128xf32> to vector<8x128xf32>
    %19 = arith.addf %16, %18 : vector<8x128xf32>
    %c0_22 = arith.constant 0 : index
    %c0_23 = arith.constant 0 : index
    %c0_24 = arith.constant 0 : index
    %20 = vector.load %arg5[%c0_22, %c0_23, %c0_24] : memref<1x8x128xf32, #tpu.memory_space<vmem>>, vector<1x8x128xf32>
    %21 = vector.shape_cast %20 : vector<1x8x128xf32> to vector<8x128xf32>
    %22 = vector.shape_cast %19 : vector<8x128xf32> to vector<1x8x128xf32>
    tpu.vector_store %arg5[%c0_22, %c0_23, %c0_24], %22 {strides = array<i32>} : memref<1x8x128xf32, #tpu.memory_space<vmem>>, vector<1x8x128xf32>,
    return
  }
  func.func @transform_0(%arg0: i32, %arg1: i32) -> (i32, i32, i32, i32) {
    %c0_i32 = arith.constant 0 : i32
    %c0_i32_0 = arith.constant 0 : i32
    %c0_i32_1 = arith.constant 0 : i32
    return %arg0, %arg1, %c0_i32, %c0_i32_0 : i32, i32, i32, i32
  }
  func.func @transform_1(%arg0: i32, %arg1: i32) -> (i32, i32, i32) {
    %c0_i32 = arith.constant 0 : i32
    %c0_i32_0 = arith.constant 0 : i32
    %c0_i32_1 = arith.constant 0 : i32
    %c0_i32_2 = arith.constant 0 : i32
    return %c0_i32, %c0_i32_0, %c0_i32_1 : i32, i32, i32
  }
  func.func @transform_2(%arg0: i32, %arg1: i32) -> (i32, i32) {
    %c0_i32 = arith.constant 0 : i32
    %c0_i32_0 = arith.constant 0 : i32
    %c0_i32_1 = arith.constant 0 : i32
    return %c0_i32, %c0_i32_0 : i32, i32
  }
  func.func @transform_3(%arg0: i32, %arg1: i32) -> (i32, i32, i32) {
    %c0_i32 = arith.constant 0 : i32
    %c0_i32_0 = arith.constant 0 : i32
    return %arg0, %arg1, %c0_i32 : i32, i32, i32
  }
}

module attributes {stable_mosaic.version = 11 : i64} {
  func.func @_conv2d_same_kernel(%arg0: i32, %arg1: i32, %arg2: memref<1x1x10x72xbf16, #tpu.memory_space<vmem>>, %arg3: memref<3x72x128xbf16, #tpu.memory_space<vmem>>, %arg4: memref<1x128xf32, #tpu.memory_space<vmem>>, %arg5: memref<1x8x128xf32, #tpu.memory_space<vmem>>) attributes {dimension_semantics = [#tpu.dimension_semantics<parallel>, #tpu.dimension_semantics<parallel>], iteration_bounds = array<i64: 2, 2>, scalar_prefetch = 0 : i64, scratch_operands = 0 : i64, tpu.core_type = #tpu.core_type<tc>, window_params = [{transform_indices = @transform_0, window_bounds = array<i64: 1, 1, 10, 72>}, {pipeline_mode = #tpu.pipeline_mode<synchronous>, transform_indices = @transform_1, window_bounds = array<i64: 3, 72, 128>}, {pipeline_mode = #tpu.pipeline_mode<synchronous>, transform_indices = @transform_2, window_bounds = array<i64: 1, 128>}, {transform_indices = @transform_3, window_bounds = array<i64: 1, 8, 128>}]} {
    %c0 = arith.constant 0 : index
    %c0_0 = arith.constant 0 : index
    %c0_1 = arith.constant 0 : index
    %c0_2 = arith.constant 0 : index
    %0 = vector.load %arg2[%c0, %c0_0, %c0_1, %c0_2] : memref<1x1x10x72xbf16, #tpu.memory_space<vmem>>, vector<1x1x8x72xbf16>
    %1 = vector.shape_cast %0 : vector<1x1x8x72xbf16> to vector<8x72xbf16>
    %c0_3 = arith.constant 0 : index
    %c0_4 = arith.constant 0 : index
    %c0_5 = arith.constant 0 : index
    %2 = vector.load %arg3[%c0_3, %c0_4, %c0_5] : memref<3x72x128xbf16, #tpu.memory_space<vmem>>, vector<1x72x128xbf16>
    %3 = vector.shape_cast %2 : vector<1x72x128xbf16> to vector<72x128xbf16>
    %cst = arith.constant dense<0.000000e+00> : vector<8x128xf32>
    %4 = tpu.matmul %1, %3, %cst {dimension_numbers = #tpu.dot_dimension_numbers<[1], [0], [0], [1], [0, 0, 1, 1], [], []>} : vector<8x72xbf16>, vector<72x128xbf16>, vector<8x128xf32> -> vector<8x128xf32>
    %c0_6 = arith.constant 0 : index
    %c0_7 = arith.constant 0 : index
    %c1 = arith.constant 1 : index
    %c0_8 = arith.constant 0 : index
    %5 = vector.load %arg2[%c0_6, %c0_7, %c1, %c0_8] : memref<1x1x10x72xbf16, #tpu.memory_space<vmem>>, vector<1x1x8x72xbf16>
    %6 = vector.shape_cast %5 : vector<1x1x8x72xbf16> to vector<8x72xbf16>
    %c1_9 = arith.constant 1 : index
    %c0_10 = arith.constant 0 : index
    %c0_11 = arith.constant 0 : index
    %7 = vector.load %arg3[%c1_9, %c0_10, %c0_11] : memref<3x72x128xbf16, #tpu.memory_space<vmem>>, vector<1x72x128xbf16>
    %8 = vector.shape_cast %7 : vector<1x72x128xbf16> to vector<72x128xbf16>
    %cst_12 = arith.constant dense<0.000000e+00> : vector<8x128xf32>
    %9 = tpu.matmul %6, %8, %cst_12 {dimension_numbers = #tpu.dot_dimension_numbers<[1], [0], [0], [1], [0, 0, 1, 1], [], []>} : vector<8x72xbf16>, vector<72x128xbf16>, vector<8x128xf32> -> vector<8x128xf32>
    %10 = arith.addf %4, %9 : vector<8x128xf32>
    %c0_13 = arith.constant 0 : index
    %c0_14 = arith.constant 0 : index
    %c2 = arith.constant 2 : index
    %c0_15 = arith.constant 0 : index
    %11 = vector.load %arg2[%c0_13, %c0_14, %c2, %c0_15] : memref<1x1x10x72xbf16, #tpu.memory_space<vmem>>, vector<1x1x8x72xbf16>
    %12 = vector.shape_cast %11 : vector<1x1x8x72xbf16> to vector<8x72xbf16>
    %c2_16 = arith.constant 2 : index
    %c0_17 = arith.constant 0 : index
    %c0_18 = arith.constant 0 : index
    %13 = vector.load %arg3[%c2_16, %c0_17, %c0_18] : memref<3x72x128xbf16, #tpu.memory_space<vmem>>, vector<1x72x128xbf16>
    %14 = vector.shape_cast %13 : vector<1x72x128xbf16> to vector<72x128xbf16>
    %cst_19 = arith.constant dense<0.000000e+00> : vector<8x128xf32>
    %15 = tpu.matmul %12, %14, %cst_19 {dimension_numbers = #tpu.dot_dimension_numbers<[1], [0], [0], [1], [0, 0, 1, 1], [], []>} : vector<8x72xbf16>, vector<72x128xbf16>, vector<8x128xf32> -> vector<8x128xf32>
    %16 = arith.addf %10, %15 : vector<8x128xf32>
    %c0_20 = arith.constant 0 : index
    %c0_21 = arith.constant 0 : index
    %17 = vector.load %arg4[%c0_20, %c0_21] : memref<1x128xf32, #tpu.memory_space<vmem>>, vector<1x128xf32>
    %18 = vector.broadcast %17 : vector<1x128xf32> to vector<8x128xf32>
    %19 = arith.addf %16, %18 : vector<8x128xf32>
    %c0_22 = arith.constant 0 : index
    %c0_23 = arith.constant 0 : index
    %c0_24 = arith.constant 0 : index
    %20 = vector.load %arg5[%c0_22, %c0_23, %c0_24] : memref<1x8x128xf32, #tpu.memory_space<vmem>>, vector<1x8x128xf32>
    %21 = vector.shape_cast %20 : vector<1x8x128xf32> to vector<8x128xf32>
    %22 = vector.shape_cast %19 : vector<8x128xf32> to vector<1x8x128xf32>
    tpu.vector_store %arg5[%c0_22, %c0_23, %c0_24], %22 {strides = array<i32>} : memref<1x8x128xf32, #tpu.memory_space<vmem>>, vector<1x8x128xf32>,
    return
  }
  func.func @transform_0(%arg0: i32, %arg1: i32) -> (i32, i32, i32, i32) {
    %c0_i32 = arith.constant 0 : i32
    %c0_i32_0 = arith.constant 0 : i32
    %c0_i32_1 = arith.constant 0 : i32
    return %arg0, %arg1, %c0_i32, %c0_i32_0 : i32, i32, i32, i32
  }
  func.func @transform_1(%arg0: i32, %arg1: i32) -> (i32, i32, i32) {
    %c0_i32 = arith.constant 0 : i32
    %c0_i32_0 = arith.constant 0 : i32
    %c0_i32_1 = arith.constant 0 : i32
    %c0_i32_2 = arith.constant 0 : i32
    return %c0_i32, %c0_i32_0, %c0_i32_1 : i32, i32, i32
  }
  func.func @transform_2(%arg0: i32, %arg1: i32) -> (i32, i32) {
    %c0_i32 = arith.constant 0 : i32
    %c0_i32_0 = arith.constant 0 : i32
    %c0_i32_1 = arith.constant 0 : i32
    return %c0_i32, %c0_i32_0 : i32, i32
  }
  func.func @transform_3(%arg0: i32, %arg1: i32) -> (i32, i32, i32) {
    %c0_i32 = arith.constant 0 : i32
    %c0_i32_0 = arith.constant 0 : i32
    return %arg0, %arg1, %c0_i32 : i32, i32, i32
  }
}

</mosaic_0001>

<bundles_post_ra>
// kernel: tpu_custom_call.1
= control target key start
LH: loop header
LB: loop body
LE: loop exit
PB: predicated region body
PF: predicated region fallthrough
CT: control target
= control target key end

     0   :  { %8 = vsyncpa [#allocation3], 0  ;;  %s1165_s0 = inlined_call_operand.vmem [shape: bf16[2,2,10,72], index: 0, kind: input, shape index: {}]   ;;  %s1166_s1 = inlined_call_operand.hbm [shape: bf16[3,72,128], index: 1, kind: input, shape index: {}]   ;;  %s1167_s2 = inlined_call_operand.vmem [shape: f32[1,128], index: 2, kind: input, shape index: {}]   ;;  %s1168_s3 = inlined_call_operand.hbm [shape: f32[2,16,128], index: 3, kind: output, shape index: {}]  }
   0x1   :  { %9 = vsyncpa [#allocation4], 0 }
   0x2   :  { %11 = vsyncpa [#allocation4 + $0x1], 0  ;;  %s955_s12 = smov 0   ;;  %s957_s13 = smov 0  }
   0x3   :  { %s959_s14 = smov 0   ;;  %s961_s15 = smov 0  }
   0x4   :  { %s963_s16 = smov 0   ;;  %s965_s17 = smov 0  }
   0x5   :  { %s967_s18 = smov 0   ;;  %s969_s19 = smov 0  }
   0x6 LB: > { %s601_s20 = sadd.s32 4294967295, %s927_s19   ;;  %s602_s21 = sadd.s32 4294967294, %s927_s19   ;;  %s927_s19 = sphi %s969_s19, %s17_s19   ;;  %s923_s18 = sphi %s967_s18, %s1188_s18   ;;  %s919_s17 = sphi %s965_s17, %s1187_s17   ;;  %s915_s16 = sphi %s963_s16, %s1186_s16   ;;  %s911_s15 = sphi %s961_s15, %s1185_s15   ;;  %s907_s14 = sphi %s959_s14, %s1184_s14   ;;  %s903_s13 = sphi %s957_s13, %s1183_s13   ;;  %s899_s12 = sphi %s955_s12, %s1182_s12  }
   0x7   : > { %s26_s22 = sadd.s32 1, %s919_s17  ;;  %s29_s23 = sadd.s32 1, %s923_s18 }
   0x8   : > { %p27_p0 = scmp.ge.s32.totalorder %s26_s22, 2  ;;  %s108_s24 = sadd.s32 1, %s907_s14 }
   0x9   : > { %p118_p1 = scmp.ne.s32.totalorder %s907_s14, %s903_s13  ;;  %p119_p2 = scmp.eq.s32.totalorder %s601_s20, 3 }
   0xa   : > { %s1190_s22 = smov (%p27_p0, %s26_s22), 0  ;;  %s1192_s23 = smov (!%p27_p0, %s29_s23), %s923_s18 }
   0xb   : > { %s104_s25 = ssub.s32 %s919_s17, %s1190_s22  ;;  %p1007_p3 = por %p119_p2, %p118_p1 }
   0xc   : > { %p31_p4 = scmp.ge.s32.totalorder %s1192_s23, 2  ;;  %p124_p5 = scmp.ne.s32.totalorder %s903_s13, %s899_s12 }
   0xd   : > { %s1173_s26 = scalar_select %p1007_p3, 1, 0 }
   0xe   : > { %p125_p6 = scmp.eq.s32.totalorder %s602_s21, 3  ;;  %p603_p7 = scmp.ge.s32.totalorder %s927_s19, 1 }
   0xf   : > { %s1194_s23 = smov (%p31_p4, %s1192_s23), 0  ;;  %p132_p9 = scmp.lt.s32.totalorder %s927_s19, 5 }
  0x10   : > { %p1016_p8 = por %p125_p6, %p124_p5  ;;  %s103_s28 = ssub.s32 %s923_s18, %s1194_s23 }
  0x11   : > { %s105_s29 = sor.u32 %s104_s25, %s103_s28  ;;  %p1023_p10 = pnand %p603_p7, %p132_p9 }
  0x12   : > { %s1174_s27 = scalar_select %p1016_p8, 1, 0 }
  0x13   : > { %s1175_s30 = scalar_select %p1023_p10, 1, 0 }
  0x14   : > { %p106_p11 = scmp.eq.s32.totalorder %s105_s29, 0  ;;  %p1027_p12 = scmp.eq.s32.totalorder %s601_s20, 0 }
  0x15   : > { %p704_p13 = pneg %p1023_p10  ;;  %s929_s6 = smov [#allocation2]  }
  0x16   : > { %s1176_s4 = scalar_select %p1027_p12, 1, 0 }
  0x17   : > { %s1034_s5 = scalar_select %p106_p11, %s907_s14, %s108_s24  }
  0x18   : > { %s144_s7 = sshll.u32 %s929_s6, 4  ;;  %p1038_p0 = pnand %p1027_p12, %p704_p13  ;;  %s145_s7 = int_to_ptr.vmem [resolvable:$true] %s144_s7 }
  0x19   : > { %s801_s11 = scalar_lea.hbm %s1166_s1, 1728 }
  0x1a   : > { %p802_p1 = scmp.ne.s32.totalorder %s1166_s1, %s801_s11  ;;  %p803_p2 = pneg %p1038_p0 }
  0x1b   : > { %p808_p6 = scmp.lt.u32.totalorder %s801_s11, %s1166_s1 }
  0x1c   : > { %p804_p4 = pnand %p803_p2, %p802_p1 }
  0x1e   : > { %p805_p5 = pneg %p804_p4 }
  0x20   : > { %p810_p7 = pnand %p808_p6, %p805_p5 }
  0x22   : > { %813 = shalt.err (!%p810_p7)
}
  0x23   : > { %s814_s28 = scalar_lea.vmem %s145_s7, 1728  ;;  %p822_p8 = scmp.lt.s32.totalorder %s145_s7, %s145_s7 }
  0x24   : > { %p815_p9 = scmp.ne.s32.totalorder %s145_s7, %s814_s28  ;;  %p823_p3 = scmp.lt.s32.totalorder %s814_s28, %s814_s28 }
  0x26   : > { %p817_p11 = pnand %p815_p9, %p803_p2  ;;  %p824_p12 = por %p823_p3, %p822_p8 }
  0x28   : > { %p818_p13 = pneg %p817_p11 }
  0x2a   : > { %p825_p10 = pnand %p824_p12, %p818_p13 }
  0x2c   : > { %828 = shalt.err (!%p825_p10)
}
  0x2d   : > { %s930_s29 = smov 64   ;;  %s931_s6 = smov 4  }
  0x2e   : > { %707 = dma.hbm_to_vmem [thread:$0]  (!%p1038_p0), %s1166_s1, 1728, %s145_s7, [#allocation3], %s930_s29, %s930_s29, %s931_s6  }
  0x2f   : > { %p1178_p1 = scmp.ne.s32.totalorder %s1175_s30, 0 }
  0x30   : > { %p1179_p4 = scmp.ne.s32.totalorder (!%p1178_p1), %s1176_s4, 0 }
  0x31   : > { %175 = sbr.rel (%p1178_p1) target bundleno = 329 (0x149), region = 32 }
  0x38   : > { %890 = dma.done.wait (%p1179_p4), [#allocation3], 1728  }
  0x39   : > { %892 = vsyncadd (%p1179_p4), [#allocation3], 4294965568  ;;  %p203_p3 = scmp.lt.s32.totalorder %s915_s16, 1  ;;  %v932_v0 = vmov 0.0   ;;  %p205_p8 = scmp.lt.s32.totalorder %s911_s15, 1  ;;  %vm933_vm0 = vmmov 0  }
  0x3a   : > { %656 = vmatprep.subr.bf16.mxu0 %v932_v0  ;;  %670 = vmatprep.subr.bf16.mxu1 %v932_v0  ;;  %v784_v1 = vld [vmem:[#allocation2 + $0x24] sm:$0xff]   ;;  %v786_v3 = vld [vmem:[#allocation2 + $0x2c] sm:$0xff]   ;;  %v788_v5 = vld [vmem:[#allocation2 + $0x34] sm:$0xff]   ;;  %vm277_vm1 = vcmask 1043456   ;;  %vm273_vm2 = vcmask 588800   ;;  %s200_s28 = sand.u32 1, %s903_s13  }
  0x3b   : > { %666 = vmatprep.mubr.msk.bf16.mxu0 %vm933_vm0, %v932_v0  ;;  %s204_s30 = scalar_select %p203_p3, %s915_s16, 1  ;;  %680 = vmatprep.mubr.msk.bf16.mxu1 %vm933_vm0, %v932_v0  ;;  %v785_v2 = vld [vmem:[#allocation2] sm:$0xff]   ;;  %v787_v4 = vld [vmem:[#allocation2 + $0x8] sm:$0xff]   ;;  %v789_v6 = vld [vmem:[#allocation2 + $0x10] sm:$0xff]  }
  0x3c   : > { %s206_s4 = scalar_select %p205_p8, %s911_s15, 1  ;;  %657 = vmatpush3.bf16.msra.mxu0 %v784_v1  ;;  %671 = vmatpush3.bf16.msra.mxu1 %v785_v2  ;;  %v790_v7 = vld [vmem:[#allocation2 + $0x3c] sm:$0xff]   ;;  %v792_v11 = vld [vmem:[#allocation2 + $0x44] ss:$0 sps:$4 sm:$0xff]   ;;  %v795_v20 = vld [vmem:[#allocation2 + $0x48] sm:$0xff]  }
  0x3d   : > { %s610_s7 = sshll.u32 %s204_s30, 2  ;;  %658 = vmatprep.subr.bf16.mxu0 %v932_v0  ;;  %672 = vmatprep.subr.bf16.mxu1 %v932_v0  ;;  %v791_v8 = vld [vmem:[#allocation2 + $0x18] sm:$0xff]   ;;  %v793_v13 = vld [vmem:[#allocation2 + $0x20] ss:$0 sps:$4 sm:$0xff]   ;;  %v279_v17 = vsel %vm277_vm1, %v792_v11, 0  ;;  %v796_v21 = vld [vmem:[#allocation2 + $0x50] sm:$0xff]  }
  0x3e   : > { %s609_s8 = sshll.u32 %s206_s4, 1  ;;  %v352_v18 = vsel %vm277_vm1, %v793_v13, 0  ;;  %v797_v22 = vld [vmem:[#allocation2 + $0x58] sm:$0xff]   ;;  %v798_v23 = vld [vmem:[#allocation2 + $0x60] sm:$0xff]   ;;  %v799_v25 = vld [vmem:[#allocation2 + $0x68] ss:$0 sps:$4 sm:$0xff]  }
  0x3f   : > { %s209_s11 = sadd.s32 %s610_s7, %s609_s8  ;;  %v440_v27 = vsel %vm277_vm1, %v799_v25, 0  ;;  %s608_s29 = sshll.u32 %s200_s28, 3  ;;  %v632_v39 = vld [vmem:[%s1167_s2] ss:$0 sm:$0xff] }
  0x40   : > { %s611_s20 = sshll.u32 %s209_s11, 2  ;;  %659 = vmatpush3.bf16.msra.mxu0 %v786_v3  ;;  %673 = vmatpush3.bf16.msra.mxu1 %v787_v4  ;;  %s634_s6 = sshll.u32 %s915_s16, 1 }
  0x41   : > { %s1079_s25 = scalar_lea.vmem %s1165_s0, %s611_s20  ;;  %660 = vmatprep.subr.bf16.mxu0 %v932_v0  ;;  %674 = vmatprep.subr.bf16.mxu1 %v932_v0  ;;  %s504_s9 = sadd.s32 %s911_s15, %s634_s6 }
  0x42   : > { %v213_v9 = vld [vmem:[%s1079_s25] sm:$0xf]  ;;  %v223_v10 = vld [vmem:[%s1079_s25 + $0x4] sm:$0x1]  ;;  %s635_s4 = sshll.u32 %s504_s9, 7  ;;  %s202_s7 = scalar_lea.vmem [#allocation5], %s608_s29 }
  0x43   : > { %v612_v12 = vcombine.low %v213_v9, %v223_v10  ;;  %v394_v24 = vld [vmem:[%s1079_s25] sm:$0xe]  ;;  %s508_s8 = sshll.u32 %s202_s7, 4  ;;  %s1112_s21 = scalar_lea.hbm %s1168_s3, %s635_s4  ;;  %s1114_s8 = int_to_ptr.vmem [resolvable:$true] %s508_s8 }
  0x44   : > { %661 = vmatpush3.bf16.msra.mxu0 %v788_v5  ;;  %675 = vmatpush3.bf16.msra.mxu1 %v789_v6  ;;  %v625_v26 = vcombine.low %v394_v24, %v223_v10  ;;  %s493_s15 = scalar_lea.sflag [#allocation4], %s200_s28  ;;  %s829_s16 = scalar_lea.vmem %s1114_s8, 128 }
  0x45   : > { %662 = vmatprep.subr.bf16.mxu0 %v932_v0  ;;  %676 = vmatprep.subr.bf16.mxu1 %v932_v0  ;;  %v242_v14 = vshll.u32 %v612_v12, 16  ;;  %v240_v15 = vshrl.u32 %v612_v12, 16  ;;  %p830_p10 = scmp.ne.s32.totalorder %s1114_s8, %s829_s16  ;;  %p1180_p12 = scmp.ne.s32.totalorder %s1173_s26, 0 }
  0x46   : > { %v408_v28 = vrot.slane %v625_v26, 1  ;;  %s934_s24 = smov [#allocation5]  }
  0x47   : > { %v244_v16 = vrot.slane %v242_v14, 1  ;;  %p831_p0 = pnand %p830_p10, %p1180_p12  ;;  %s833_s25 = sshll.u32 %s934_s24, 4  ;;  %s834_s25 = int_to_ptr.vmem [resolvable:$false] %s833_s25 }
  0x48   : > { %663 = vmatpush3.bf16.msra.mxu0 %v790_v7  ;;  %677 = vmatpush3.bf16.msra.mxu1 %v791_v8  ;;  %s835_s29 = scalar_lea.vmem %s834_s25, 256  ;;  %p836_p5 = scmp.lt.s32.totalorder %s1114_s8, %s834_s25 }
  0x49   : > { %664 = vmatprep.subr.bf16.mxu0 %v932_v0  ;;  %678 = vmatprep.subr.bf16.mxu1 %v932_v0  ;;  %v245_v19 = vor.u32 %v244_v16, %v240_v15  ;;  %p832_p2 = pneg %p831_p0  ;;  %p837_p6 = scmp.lt.s32.totalorder %s835_s29, %s829_s16 }
  0x4b   : > { %p838_p7 = por %p837_p6, %p836_p5 }
  0x4c   : > { %665 = vmatpush3.bf16.msra.mxu0 %v279_v17  ;;  %679 = vmatpush3.bf16.msra.mxu1 %v352_v18 }
  0x4d   : > { %684 = vmatprep.subr.bf16.mxu0 %v932_v0  ;;  %p839_p9 = pnand %p838_p7, %p832_p2 }
  0x4f   : > { %667 = vmatmul.mubr.msk.bf16.vlgmr.msra.gmra.mrb[0].mxu0 %vm273_vm2, %v245_v19  ;;  %681 = vmatmul.mubr.msk.bf16.vlgmr.msra.gmra.mrb[0].mxu1 %vm273_vm2, %v213_v9 }
  0x50   : > { %685 = vmatpush3.bf16.msra.mxu0 %v795_v20  ;;  %694 = vmatprep.mubr.msk.bf16.mxu0 %vm933_vm0, %v932_v0 }
  0x51   : > { %686 = vmatprep.subr.bf16.mxu0 %v932_v0 }
  0x54   : > { %687 = vmatpush3.bf16.msra.mxu0 %v796_v21 }
  0x55   : > { %688 = vmatprep.subr.bf16.mxu0 %v932_v0 }
  0x58   : > { %689 = vmatpush3.bf16.msra.mxu0 %v797_v22 }
  0x59   : > { %690 = vmatprep.subr.bf16.mxu0 %v932_v0 }
  0x5c   : > { %691 = vmatpush3.bf16.msra.mxu0 %v798_v23 }
  0x5d   : > { %692 = vmatprep.subr.bf16.mxu0 %v932_v0 }
  0x60   : > { %693 = vmatpush3.bf16.msra.mxu0 %v440_v27 }
  0x63   : > { %695 = vmatmul.mubr.msk.bf16.vlgmr.msra.gmra.mrb[4].mxu0 %vm273_vm2, %v408_v28 }
 0x122   : > { %v315_v29 = vpop.f32.mrb[0].mxu0  ;;  %v388_v31 = vpop.f32.mrb[0].mxu1 }
 0x123   : > { %v668_v30 = vpop.f32.mrb[1].mxu0  ;;  %v389_v32 = vadd.f32 %v388_v31, %v315_v29  ;;  %v682_v34 = vpop.f32.mrb[1].mxu1 }
 0x124   : > { %v318_v33 = vpop.f32.mrb[2].mxu0  ;;  %v391_v36 = vpop.f32.mrb[2].mxu1 }
 0x125   : > { %v669_v35 = vpop.f32.mrb[3].mxu0  ;;  %v683_v37 = vpop.f32.mrb[3].mxu1 }
 0x136   : > { %v476_v38 = vpop.f32.mrb[4].mxu0 }
 0x137   : > { %v482_v40 = vadd.f32 %v476_v38, %v389_v32  ;;  %v696_v41 = vpop.f32.mrb[5].mxu0 }
 0x138   : > { %v479_v42 = vpop.f32.mrb[6].mxu0 }
 0x139   : > { %v490_v43 = vadd.f32 %v632_v39, %v482_v40  ;;  %v697_v44 = vpop.f32.mrb[7].mxu0 }
 0x13b   : > { %491 = vst [vmem:[%s202_s7] sm:$0xff] %v490_v43 }
 0x13c   : > { %842 = shalt.err (!%p839_p9)
}
 0x13d   : > { %s843_s28 = scalar_lea.hbm %s1112_s21, 128  ;;  %s847_s10 = scalar_lea.hbm %s1168_s3, 512 }
 0x13e   : > { %p844_p11 = scmp.ne.s32.totalorder %s1112_s21, %s843_s28  ;;  %p848_p4 = scmp.lt.u32.totalorder %s1112_s21, %s1168_s3 }
 0x13f   : > { %p849_p3 = scmp.lt.u32.totalorder %s847_s10, %s843_s28  ;;  %p851_p10 = scmp.lt.u32.totalorder %s843_s28, %s1112_s21 }
 0x140   : > { %p845_p13 = pnand %p844_p11, %p1180_p12 }
 0x141   : > { %p850_p8 = por %p849_p3, %p848_p4 }
 0x142   : > { %p846_p1 = pneg %p845_p13 }
 0x143   : > { %p852_p0 = por %p851_p10, %p850_p8 }
 0x145   : > { %p853_p2 = pnand %p852_p0, %p846_p1 }
 0x147   : > { %856 = shalt.err (!%p853_p2)
}
 0x148   : > { %702 = dma.vmem_to_hbm [thread:$0]  (%p1180_p12), %s1114_s8, 128, %s1112_s21, %s493_s15  }
 0x149 PF: > { %p714_p5 = scmp.ge.s32.totalorder %s927_s19, 2  ;;  %s520_s7 = sand.u32 1, %s899_s12  }
 0x14a   : > { %p1181_p6 = scmp.ne.s32.totalorder %s1174_s27, 0  ;;  %s521_s11 = scalar_lea.sflag [#allocation4], %s520_s7 }
 0x14c   : > { %p709_p7 = pnand %p714_p5, %p1181_p6 }
 0x14e   : > { %894 = dma.done.wait (!%p709_p7), %s521_s11, 128  }
 0x14f   : > { %896 = vsyncadd (!%p709_p7), %s521_s11, 4294967168  ;;  %s17_s19 = sadd.s32 1, %s927_s19   ;;  %s1182_s12 = smov %s903_s13 }
 0x150   : > { %p14_p9 = scmp.ge.s32.totalorder %s17_s19, 6   ;;  %s1183_s13 = smov %s907_s14 }
 0x151   : > { %s1184_s14 = smov %s1034_s5  ;;  %s1185_s15 = smov %s919_s17 }
 0x152   : > { %s1186_s16 = smov %s923_s18  ;;  %s1187_s17 = smov %s1190_s22 }
 0x153   : > { %s1188_s18 = smov %s1194_s23  ;;  %16 = sbr.rel (!%p14_p9) target bundleno = 6 (0x6), region = 74 }
 0x15a   :  { %526 = vsyncpa [#allocation3], 1 }
 0x15b   :  { %528 = vsyncpa [#allocation3 + $0x1], 1 }
 0x15c   :  { %529 = vsyncpa [#allocation4], 1 }
 0x15d   :  { %531 = vsyncpa [#allocation4 + $0x1], 1 }

// kernel: tpu_custom_call.1
= control target key start
LH: loop header
LB: loop body
LE: loop exit
PB: predicated region body
PF: predicated region fallthrough
CT: control target
= control target key end

     0   :  { %8 = vsyncpa [#allocation3], 0  ;;  %s1165_s0 = inlined_call_operand.vmem [shape: bf16[2,2,10,72], index: 0, kind: input, shape index: {}]   ;;  %s1166_s1 = inlined_call_operand.hbm [shape: bf16[3,72,128], index: 1, kind: input, shape index: {}]   ;;  %s1167_s2 = inlined_call_operand.vmem [shape: f32[1,128], index: 2, kind: input, shape index: {}]   ;;  %s1168_s3 = inlined_call_operand.hbm [shape: f32[2,16,128], index: 3, kind: output, shape index: {}]  }
   0x1   :  { %9 = vsyncpa [#allocation4], 0 }
   0x2   :  { %11 = vsyncpa [#allocation4 + $0x1], 0  ;;  %s955_s12 = smov 0   ;;  %s957_s13 = smov 0  }
   0x3   :  { %s959_s14 = smov 0   ;;  %s961_s15 = smov 0  }
   0x4   :  { %s963_s16 = smov 0   ;;  %s965_s17 = smov 0  }
   0x5   :  { %s967_s18 = smov 0   ;;  %s969_s19 = smov 0  }
   0x6 LB: > { %s601_s20 = sadd.s32 4294967295, %s927_s19   ;;  %s602_s21 = sadd.s32 4294967294, %s927_s19   ;;  %s927_s19 = sphi %s969_s19, %s17_s19   ;;  %s923_s18 = sphi %s967_s18, %s1188_s18   ;;  %s919_s17 = sphi %s965_s17, %s1187_s17   ;;  %s915_s16 = sphi %s963_s16, %s1186_s16   ;;  %s911_s15 = sphi %s961_s15, %s1185_s15   ;;  %s907_s14 = sphi %s959_s14, %s1184_s14   ;;  %s903_s13 = sphi %s957_s13, %s1183_s13   ;;  %s899_s12 = sphi %s955_s12, %s1182_s12  }
   0x7   : > { %s26_s22 = sadd.s32 1, %s919_s17  ;;  %s29_s23 = sadd.s32 1, %s923_s18 }
   0x8   : > { %p27_p0 = scmp.ge.s32.totalorder %s26_s22, 2  ;;  %s108_s24 = sadd.s32 1, %s907_s14 }
   0x9   : > { %p118_p1 = scmp.ne.s32.totalorder %s907_s14, %s903_s13  ;;  %p119_p2 = scmp.eq.s32.totalorder %s601_s20, 3 }
   0xa   : > { %s1190_s22 = smov (%p27_p0, %s26_s22), 0  ;;  %s1192_s23 = smov (!%p27_p0, %s29_s23), %s923_s18 }
   0xb   : > { %s104_s25 = ssub.s32 %s919_s17, %s1190_s22  ;;  %p1007_p3 = por %p119_p2, %p118_p1 }
   0xc   : > { %p31_p4 = scmp.ge.s32.totalorder %s1192_s23, 2  ;;  %p124_p5 = scmp.ne.s32.totalorder %s903_s13, %s899_s12 }
   0xd   : > { %s1173_s26 = scalar_select %p1007_p3, 1, 0 }
   0xe   : > { %p125_p6 = scmp.eq.s32.totalorder %s602_s21, 3  ;;  %p603_p7 = scmp.ge.s32.totalorder %s927_s19, 1 }
   0xf   : > { %s1194_s23 = smov (%p31_p4, %s1192_s23), 0  ;;  %p132_p9 = scmp.lt.s32.totalorder %s927_s19, 5 }
  0x10   : > { %p1016_p8 = por %p125_p6, %p124_p5  ;;  %s103_s28 = ssub.s32 %s923_s18, %s1194_s23 }
  0x11   : > { %s105_s29 = sor.u32 %s104_s25, %s103_s28  ;;  %p1023_p10 = pnand %p603_p7, %p132_p9 }
  0x12   : > { %s1174_s27 = scalar_select %p1016_p8, 1, 0 }
  0x13   : > { %s1175_s30 = scalar_select %p1023_p10, 1, 0 }
  0x14   : > { %p106_p11 = scmp.eq.s32.totalorder %s105_s29, 0  ;;  %p1027_p12 = scmp.eq.s32.totalorder %s601_s20, 0 }
  0x15   : > { %p704_p13 = pneg %p1023_p10  ;;  %s929_s6 = smov [#allocation2]  }
  0x16   : > { %s1176_s4 = scalar_select %p1027_p12, 1, 0 }
  0x17   : > { %s1034_s5 = scalar_select %p106_p11, %s907_s14, %s108_s24  }
  0x18   : > { %s144_s7 = sshll.u32 %s929_s6, 4  ;;  %p1038_p0 = pnand %p1027_p12, %p704_p13  ;;  %s145_s7 = int_to_ptr.vmem [resolvable:$true] %s144_s7 }
  0x19   : > { %s801_s11 = scalar_lea.hbm %s1166_s1, 1728 }
  0x1a   : > { %p802_p1 = scmp.ne.s32.totalorder %s1166_s1, %s801_s11  ;;  %p803_p2 = pneg %p1038_p0 }
  0x1b   : > { %p808_p6 = scmp.lt.u32.totalorder %s801_s11, %s1166_s1 }
  0x1c   : > { %p804_p4 = pnand %p803_p2, %p802_p1 }
  0x1e   : > { %p805_p5 = pneg %p804_p4 }
  0x20   : > { %p810_p7 = pnand %p808_p6, %p805_p5 }
  0x22   : > { %813 = shalt.err (!%p810_p7)
}
  0x23   : > { %s814_s28 = scalar_lea.vmem %s145_s7, 1728  ;;  %p822_p8 = scmp.lt.s32.totalorder %s145_s7, %s145_s7 }
  0x24   : > { %p815_p9 = scmp.ne.s32.totalorder %s145_s7, %s814_s28  ;;  %p823_p3 = scmp.lt.s32.totalorder %s814_s28, %s814_s28 }
  0x26   : > { %p817_p11 = pnand %p815_p9, %p803_p2  ;;  %p824_p12 = por %p823_p3, %p822_p8 }
  0x28   : > { %p818_p13 = pneg %p817_p11 }
  0x2a   : > { %p825_p10 = pnand %p824_p12, %p818_p13 }
  0x2c   : > { %828 = shalt.err (!%p825_p10)
}
  0x2d   : > { %s930_s29 = smov 64   ;;  %s931_s6 = smov 4  }
  0x2e   : > { %707 = dma.hbm_to_vmem [thread:$0]  (!%p1038_p0), %s1166_s1, 1728, %s145_s7, [#allocation3], %s930_s29, %s930_s29, %s931_s6  }
  0x2f   : > { %p1178_p1 = scmp.ne.s32.totalorder %s1175_s30, 0 }
  0x30   : > { %p1179_p4 = scmp.ne.s32.totalorder (!%p1178_p1), %s1176_s4, 0 }
  0x31   : > { %175 = sbr.rel (%p1178_p1) target bundleno = 329 (0x149), region = 32 }
  0x38   : > { %890 = dma.done.wait (%p1179_p4), [#allocation3], 1728  }
  0x39   : > { %892 = vsyncadd (%p1179_p4), [#allocation3], 4294965568  ;;  %p203_p3 = scmp.lt.s32.totalorder %s915_s16, 1  ;;  %v932_v0 = vmov 0.0   ;;  %p205_p8 = scmp.lt.s32.totalorder %s911_s15, 1  ;;  %vm933_vm0 = vmmov 0  }
  0x3a   : > { %656 = vmatprep.subr.bf16.mxu0 %v932_v0  ;;  %670 = vmatprep.subr.bf16.mxu1 %v932_v0  ;;  %v784_v1 = vld [vmem:[#allocation2 + $0x24] sm:$0xff]   ;;  %v786_v3 = vld [vmem:[#allocation2 + $0x2c] sm:$0xff]   ;;  %v788_v5 = vld [vmem:[#allocation2 + $0x34] sm:$0xff]   ;;  %vm277_vm1 = vcmask 1043456   ;;  %vm273_vm2 = vcmask 588800   ;;  %s200_s28 = sand.u32 1, %s903_s13  }
  0x3b   : > { %666 = vmatprep.mubr.msk.bf16.mxu0 %vm933_vm0, %v932_v0  ;;  %s204_s30 = scalar_select %p203_p3, %s915_s16, 1  ;;  %680 = vmatprep.mubr.msk.bf16.mxu1 %vm933_vm0, %v932_v0  ;;  %v785_v2 = vld [vmem:[#allocation2] sm:$0xff]   ;;  %v787_v4 = vld [vmem:[#allocation2 + $0x8] sm:$0xff]   ;;  %v789_v6 = vld [vmem:[#allocation2 + $0x10] sm:$0xff]  }
  0x3c   : > { %s206_s4 = scalar_select %p205_p8, %s911_s15, 1  ;;  %657 = vmatpush3.bf16.msra.mxu0 %v784_v1  ;;  %671 = vmatpush3.bf16.msra.mxu1 %v785_v2  ;;  %v790_v7 = vld [vmem:[#allocation2 + $0x3c] sm:$0xff]   ;;  %v792_v11 = vld [vmem:[#allocation2 + $0x44] ss:$0 sps:$4 sm:$0xff]   ;;  %v795_v20 = vld [vmem:[#allocation2 + $0x48] sm:$0xff]  }
  0x3d   : > { %s610_s7 = sshll.u32 %s204_s30, 2  ;;  %658 = vmatprep.subr.bf16.mxu0 %v932_v0  ;;  %672 = vmatprep.subr.bf16.mxu1 %v932_v0  ;;  %v791_v8 = vld [vmem:[#allocation2 + $0x18] sm:$0xff]   ;;  %v793_v13 = vld [vmem:[#allocation2 + $0x20] ss:$0 sps:$4 sm:$0xff]   ;;  %v279_v17 = vsel %vm277_vm1, %v792_v11, 0  ;;  %v796_v21 = vld [vmem:[#allocation2 + $0x50] sm:$0xff]  }
  0x3e   : > { %s609_s8 = sshll.u32 %s206_s4, 1  ;;  %v352_v18 = vsel %vm277_vm1, %v793_v13, 0  ;;  %v797_v22 = vld [vmem:[#allocation2 + $0x58] sm:$0xff]   ;;  %v798_v23 = vld [vmem:[#allocation2 + $0x60] sm:$0xff]   ;;  %v799_v25 = vld [vmem:[#allocation2 + $0x68] ss:$0 sps:$4 sm:$0xff]  }
  0x3f   : > { %s209_s11 = sadd.s32 %s610_s7, %s609_s8  ;;  %v440_v27 = vsel %vm277_vm1, %v799_v25, 0  ;;  %s608_s29 = sshll.u32 %s200_s28, 3  ;;  %v632_v39 = vld [vmem:[%s1167_s2] ss:$0 sm:$0xff] }
  0x40   : > { %s611_s20 = sshll.u32 %s209_s11, 2  ;;  %659 = vmatpush3.bf16.msra.mxu0 %v786_v3  ;;  %673 = vmatpush3.bf16.msra.mxu1 %v787_v4  ;;  %s634_s6 = sshll.u32 %s915_s16, 1 }
  0x41   : > { %s1079_s25 = scalar_lea.vmem %s1165_s0, %s611_s20  ;;  %660 = vmatprep.subr.bf16.mxu0 %v932_v0  ;;  %674 = vmatprep.subr.bf16.mxu1 %v932_v0  ;;  %s504_s9 = sadd.s32 %s911_s15, %s634_s6 }
  0x42   : > { %v213_v9 = vld [vmem:[%s1079_s25] sm:$0xf]  ;;  %v223_v10 = vld [vmem:[%s1079_s25 + $0x4] sm:$0x1]  ;;  %s635_s4 = sshll.u32 %s504_s9, 7  ;;  %s202_s7 = scalar_lea.vmem [#allocation5], %s608_s29 }
  0x43   : > { %v612_v12 = vcombine.low %v213_v9, %v223_v10  ;;  %v394_v24 = vld [vmem:[%s1079_s25] sm:$0xe]  ;;  %s508_s8 = sshll.u32 %s202_s7, 4  ;;  %s1112_s21 = scalar_lea.hbm %s1168_s3, %s635_s4  ;;  %s1114_s8 = int_to_ptr.vmem [resolvable:$true] %s508_s8 }
  0x44   : > { %661 = vmatpush3.bf16.msra.mxu0 %v788_v5  ;;  %675 = vmatpush3.bf16.msra.mxu1 %v789_v6  ;;  %v625_v26 = vcombine.low %v394_v24, %v223_v10  ;;  %s493_s15 = scalar_lea.sflag [#allocation4], %s200_s28  ;;  %s829_s16 = scalar_lea.vmem %s1114_s8, 128 }
  0x45   : > { %662 = vmatprep.subr.bf16.mxu0 %v932_v0  ;;  %676 = vmatprep.subr.bf16.mxu1 %v932_v0  ;;  %v242_v14 = vshll.u32 %v612_v12, 16  ;;  %v240_v15 = vshrl.u32 %v612_v12, 16  ;;  %p830_p10 = scmp.ne.s32.totalorder %s1114_s8, %s829_s16  ;;  %p1180_p12 = scmp.ne.s32.totalorder %s1173_s26, 0 }
  0x46   : > { %v408_v28 = vrot.slane %v625_v26, 1  ;;  %s934_s24 = smov [#allocation5]  }
  0x47   : > { %v244_v16 = vrot.slane %v242_v14, 1  ;;  %p831_p0 = pnand %p830_p10, %p1180_p12  ;;  %s833_s25 = sshll.u32 %s934_s24, 4  ;;  %s834_s25 = int_to_ptr.vmem [resolvable:$false] %s833_s25 }
  0x48   : > { %663 = vmatpush3.bf16.msra.mxu0 %v790_v7  ;;  %677 = vmatpush3.bf16.msra.mxu1 %v791_v8  ;;  %s835_s29 = scalar_lea.vmem %s834_s25, 256  ;;  %p836_p5 = scmp.lt.s32.totalorder %s1114_s8, %s834_s25 }
  0x49   : > { %664 = vmatprep.subr.bf16.mxu0 %v932_v0  ;;  %678 = vmatprep.subr.bf16.mxu1 %v932_v0  ;;  %v245_v19 = vor.u32 %v244_v16, %v240_v15  ;;  %p832_p2 = pneg %p831_p0  ;;  %p837_p6 = scmp.lt.s32.totalorder %s835_s29, %s829_s16 }
  0x4b   : > { %p838_p7 = por %p837_p6, %p836_p5 }
  0x4c   : > { %665 = vmatpush3.bf16.msra.mxu0 %v279_v17  ;;  %679 = vmatpush3.bf16.msra.mxu1 %v352_v18 }
  0x4d   : > { %684 = vmatprep.subr.bf16.mxu0 %v932_v0  ;;  %p839_p9 = pnand %p838_p7, %p832_p2 }
  0x4f   : > { %667 = vmatmul.mubr.msk.bf16.vlgmr.msra.gmra.mrb[0].mxu0 %vm273_vm2, %v245_v19  ;;  %681 = vmatmul.mubr.msk.bf16.vlgmr.msra.gmra.mrb[0].mxu1 %vm273_vm2, %v213_v9 }
  0x50   : > { %685 = vmatpush3.bf16.msra.mxu0 %v795_v20  ;;  %694 = vmatprep.mubr.msk.bf16.mxu0 %vm933_vm0, %v932_v0 }
  0x51   : > { %686 = vmatprep.subr.bf16.mxu0 %v932_v0 }
  0x54   : > { %687 = vmatpush3.bf16.msra.mxu0 %v796_v21 }
  0x55   : > { %688 = vmatprep.subr.bf16.mxu0 %v932_v0 }
  0x58   : > { %689 = vmatpush3.bf16.msra.mxu0 %v797_v22 }
  0x59   : > { %690 = vmatprep.subr.bf16.mxu0 %v932_v0 }
  0x5c   : > { %691 = vmatpush3.bf16.msra.mxu0 %v798_v23 }
  0x5d   : > { %692 = vmatprep.subr.bf16.mxu0 %v932_v0 }
  0x60   : > { %693 = vmatpush3.bf16.msra.mxu0 %v440_v27 }
  0x63   : > { %695 = vmatmul.mubr.msk.bf16.vlgmr.msra.gmra.mrb[4].mxu0 %vm273_vm2, %v408_v28 }
 0x122   : > { %v315_v29 = vpop.f32.mrb[0].mxu0  ;;  %v388_v31 = vpop.f32.mrb[0].mxu1 }
 0x123   : > { %v668_v30 = vpop.f32.mrb[1].mxu0  ;;  %v389_v32 = vadd.f32 %v388_v31, %v315_v29  ;;  %v682_v34 = vpop.f32.mrb[1].mxu1 }
 0x124   : > { %v318_v33 = vpop.f32.mrb[2].mxu0  ;;  %v391_v36 = vpop.f32.mrb[2].mxu1 }
 0x125   : > { %v669_v35 = vpop.f32.mrb[3].mxu0  ;;  %v683_v37 = vpop.f32.mrb[3].mxu1 }
 0x136   : > { %v476_v38 = vpop.f32.mrb[4].mxu0 }
 0x137   : > { %v482_v40 = vadd.f32 %v476_v38, %v389_v32  ;;  %v696_v41 = vpop.f32.mrb[5].mxu0 }
 0x138   : > { %v479_v42 = vpop.f32.mrb[6].mxu0 }
 0x139   : > { %v490_v43 = vadd.f32 %v632_v39, %v482_v40  ;;  %v697_v44 = vpop.f32.mrb[7].mxu0 }
 0x13b   : > { %491 = vst [vmem:[%s202_s7] sm:$0xff] %v490_v43 }
 0x13c   : > { %842 = shalt.err (!%p839_p9)
}
 0x13d   : > { %s843_s28 = scalar_lea.hbm %s1112_s21, 128  ;;  %s847_s10 = scalar_lea.hbm %s1168_s3, 512 }
 0x13e   : > { %p844_p11 = scmp.ne.s32.totalorder %s1112_s21, %s843_s28  ;;  %p848_p4 = scmp.lt.u32.totalorder %s1112_s21, %s1168_s3 }
 0x13f   : > { %p849_p3 = scmp.lt.u32.totalorder %s847_s10, %s843_s28  ;;  %p851_p10 = scmp.lt.u32.totalorder %s843_s28, %s1112_s21 }
 0x140   : > { %p845_p13 = pnand %p844_p11, %p1180_p12 }
 0x141   : > { %p850_p8 = por %p849_p3, %p848_p4 }
 0x142   : > { %p846_p1 = pneg %p845_p13 }
 0x143   : > { %p852_p0 = por %p851_p10, %p850_p8 }
 0x145   : > { %p853_p2 = pnand %p852_p0, %p846_p1 }
 0x147   : > { %856 = shalt.err (!%p853_p2)
}
 0x148   : > { %702 = dma.vmem_to_hbm [thread:$0]  (%p1180_p12), %s1114_s8, 128, %s1112_s21, %s493_s15  }
 0x149 PF: > { %p714_p5 = scmp.ge.s32.totalorder %s927_s19, 2  ;;  %s520_s7 = sand.u32 1, %s899_s12  }
 0x14a   : > { %p1181_p6 = scmp.ne.s32.totalorder %s1174_s27, 0  ;;  %s521_s11 = scalar_lea.sflag [#allocation4], %s520_s7 }
 0x14c   : > { %p709_p7 = pnand %p714_p5, %p1181_p6 }
 0x14e   : > { %894 = dma.done.wait (!%p709_p7), %s521_s11, 128  }
 0x14f   : > { %896 = vsyncadd (!%p709_p7), %s521_s11, 4294967168  ;;  %s17_s19 = sadd.s32 1, %s927_s19   ;;  %s1182_s12 = smov %s903_s13 }
 0x150   : > { %p14_p9 = scmp.ge.s32.totalorder %s17_s19, 6   ;;  %s1183_s13 = smov %s907_s14 }
 0x151   : > { %s1184_s14 = smov %s1034_s5  ;;  %s1185_s15 = smov %s919_s17 }
 0x152   : > { %s1186_s16 = smov %s923_s18  ;;  %s1187_s17 = smov %s1190_s22 }
 0x153   : > { %s1188_s18 = smov %s1194_s23  ;;  %16 = sbr.rel (!%p14_p9) target bundleno = 6 (0x6), region = 74 }
 0x15a   :  { %526 = vsyncpa [#allocation3], 1 }
 0x15b   :  { %528 = vsyncpa [#allocation3 + $0x1], 1 }
 0x15c   :  { %529 = vsyncpa [#allocation4], 1 }
 0x15d   :  { %531 = vsyncpa [#allocation4 + $0x1], 1 }

</bundles_post_ra>
